<compile_context>
chip_gen: v5e
topology: v5e:2x2
jax: 0.10.0
libtpu: 0.0.40
codegen_flags: <defaults>
</compile_context>

<pallas_src>
import math

import jax
import jax.numpy as jnp
from jax import lax
from jax.experimental import pallas as pl
from jax.experimental.pallas import tpu as pltpu

# ---- small, forward-consistent shapes -------------------------------------
B = 2              # batch
S = 8              # sequence length (sublane-aligned)
H = 32             # hidden size (stand-in for 768)
NUM_HEADS = 2
HEAD_DIM = H // NUM_HEADS
FF = 64            # FFN intermediate size
VOCAB = 50
NUM_TYPES = 2
NUM_CLASSES = 7
LN_EPS = 1e-12
LANES = 128        # lane-dense width of padded slabs / logits

# ---- packed weight slab ((ROWS_W, 128) bf16): static row offsets ----------
R_WQKV = 0             # (H , 3H) lanes 0:96   [Wq | Wk | Wv], heads fused
R_WO   = R_WQKV + H    # (H , H)  lanes 0:32
R_W1   = R_WO + H      # (H , FF) lanes 0:64
R_W2   = R_W1 + H      # (FF, H)  lanes 0:32
R_WP   = R_W2 + FF     # (H , H)  lanes 0:32
R_WC   = R_WP + H      # (H , NUM_CLASSES) lanes 0:7
ROWS_W = R_WC + H      # = 224

# ---- packed vector slab ((N_VROWS, 128) f32): row indices ------------------
V_LN0G, V_LN0B = 0, 1
V_BQKV = 2             # lanes 0:96
V_BO = 3
V_LN1G, V_LN1B = 4, 5
V_B1 = 6               # lanes 0:64
V_B2 = 7
V_LN2G, V_LN2B = 8, 9
V_BP = 10
V_BC = 11              # lanes 0:NUM_CLASSES
N_VROWS = 12


# ---------------------------------------------------------------------------
# Fused kernel: attention-mask bias + BERT-stub encoder layer + tanh pooler +
# classifier head.  Matmuls in bf16 (f32 accumulate); elementwise in f32.
# ---------------------------------------------------------------------------
def _bert_classifier_kernel(valid_ref, emb_ref, w_ref, vec_ref, out_ref):
    f32, bf16 = jnp.float32, jnp.bfloat16

    def vrow(i, n):                               # (1, n) row of f32 vec slab
        return vec_ref[i:i + 1, 0:n]

    def layer_norm(x, g, b):                      # f32 elementwise math
        mu = jnp.mean(x, axis=-1, keepdims=True)
        var = jnp.mean((x - mu) ** 2, axis=-1, keepdims=True)
        return (x - mu) * lax.rsqrt(var + LN_EPS) * g + b

    # LN / bias rows loaded ONCE (JAX does not CSE broadcast_in_dim).
    ln0_g, ln0_b = vrow(V_LN0G, H), vrow(V_LN0B, H)
    ln1_g, ln1_b = vrow(V_LN1G, H), vrow(V_LN1B, H)
    ln2_g, ln2_b = vrow(V_LN2G, H), vrow(V_LN2B, H)
    b_qkv = vrow(V_BQKV, 3 * H)
    b_o, b_1, b_2 = vrow(V_BO, H), vrow(V_B1, FF), vrow(V_B2, H)
    b_p, b_c = vrow(V_BP, H), vrow(V_BC, LANES)

    # ---- gen_attention_mask fused: additive key bias from SMEM lengths ----
    # bias[b, k] = 0.0 if k < valid_length[b] else -1e9
    pos_k = lax.broadcasted_iota(jnp.int32, (B, S), 1)
    vlen = jnp.concatenate(
        [jnp.full((1, S), valid_ref[b], jnp.int32) for b in range(B)], axis=0)
    bias = jnp.where(pos_k < vlen, 0.0, -1e9).astype(f32)          # (B, S)
    bias = jnp.concatenate([bias] * NUM_HEADS, axis=0)             # (NH*B, S)
    bias = bias.reshape(NUM_HEADS * B, 1, S)                       # bcast over q

    x = layer_norm(emb_ref[...], ln0_g, ln0_b)                     # (B*S, H) f32

    # ---- multi-head self-attention: single fused QKV matmul ---------------
    qkv = jnp.dot(x.astype(bf16), w_ref[R_WQKV:R_WQKV + H, 0:3 * H],
                  preferred_element_type=f32) + b_qkv              # (B*S, 3H)

    def split_heads(t):                 # (B*S, H) -> (NH*B, S, HEAD_DIM)
        return jnp.concatenate(
            [t[:, h * HEAD_DIM:(h + 1) * HEAD_DIM] for h in range(NUM_HEADS)],
            axis=0).reshape(NUM_HEADS * B, S, HEAD_DIM)

    qh = split_heads(qkv[:, 0:H])
    kh = split_heads(qkv[:, H:2 * H])
    vh = split_heads(qkv[:, 2 * H:3 * H])

    scale = 1.0 / math.sqrt(HEAD_DIM)
    s = jnp.einsum('nqd,nkd->nqk', qh.astype(bf16), kh.astype(bf16),
                   preferred_element_type=f32) * scale             # (NH*B,S,S)
    s = s + bias
    s = s - jnp.max(s, axis=-1, keepdims=True)
    p = jnp.exp(s)
    # approx reciprocal (EUP); small relative error vs exact softmax.
    p = p * pl.reciprocal(jnp.sum(p, axis=-1, keepdims=True), approx=True)
    ctx = jnp.einsum('nqk,nkd->nqd', p.astype(bf16), vh.astype(bf16),
                     preferred_element_type=f32)                   # (NH*B,S,HD)
    ctx = ctx.reshape(NUM_HEADS, B * S, HEAD_DIM)
    ctx_all = jnp.concatenate([ctx[h] for h in range(NUM_HEADS)], axis=-1)

    attn = jnp.dot(ctx_all.astype(bf16), w_ref[R_WO:R_WO + H, 0:H],
                   preferred_element_type=f32) + b_o
    x1 = layer_norm(x + attn, ln1_g, ln1_b)                        # (B*S, H)

    # ---- feed-forward ----
    ffn = jnp.dot(x1.astype(bf16), w_ref[R_W1:R_W1 + H, 0:FF],
                  preferred_element_type=f32) + b_1
    ffn = jax.nn.gelu(ffn)   # tanh-approx GELU; HF BERT uses erf (stub anyway)
    ffn = jnp.dot(ffn.astype(bf16), w_ref[R_W2:R_W2 + FF, 0:H],
                  preferred_element_type=f32) + b_2
    x2 = layer_norm(x1 + ffn, ln2_g, ln2_b)                        # (B*S, H)

    # ---- pooler + classifier on the full (B*S) slab; wrapper picks CLS rows.
    pooled = jnp.tanh(jnp.dot(x2.astype(bf16), w_ref[R_WP:R_WP + H, 0:H],
                              preferred_element_type=f32) + b_p)
    # TODO(synk): nn.Dropout skipped — dr_rate=None in the reference (identity).
    logits = jnp.dot(pooled.astype(bf16), w_ref[R_WC:R_WC + H, :],
                     preferred_element_type=f32) + b_c
    out_ref[...] = logits.astype(out_ref.dtype)                    # (B*S, 128)


# ---------------------------------------------------------------------------
# Parameter init (deterministic, in-script) and ONE-TIME packing.
# ---------------------------------------------------------------------------
def init_params(key):
    ks = jax.random.split(key, 11)
    std = 0.02
    n = lambda k, shp: jax.random.normal(k, shp, jnp.float32) * std
    return {
        "word_emb": n(ks[0], (VOCAB, H)),
        "pos_emb":  n(ks[1], (S, H)),
        "type_emb": n(ks[2], (NUM_TYPES, H)),
        "ln0_g": jnp.ones((1, H), jnp.float32), "ln0_b": jnp.zeros((1, H), jnp.float32),
        "wq": n(ks[3], (NUM_HEADS, H, HEAD_DIM)), "bq": jnp.zeros((NUM_HEADS, 1, HEAD_DIM), jnp.float32),
        "wk": n(ks[4], (NUM_HEADS, H, HEAD_DIM)), "bk": jnp.zeros((NUM_HEADS, 1, HEAD_DIM), jnp.float32),
        "wv": n(ks[5], (NUM_HEADS, H, HEAD_DIM)), "bv": jnp.zeros((NUM_HEADS, 1, HEAD_DIM), jnp.float32),
        "wo": n(ks[6], (NUM_HEADS, HEAD_DIM, H)), "bo": jnp.zeros((1, H), jnp.float32),
        "ln1_g": jnp.ones((1, H), jnp.float32), "ln1_b": jnp.zeros((1, H), jnp.float32),
        "w1": n(ks[7], (H, FF)), "b1": jnp.zeros((1, FF), jnp.float32),
        "w2": n(ks[8], (FF, H)), "b2": jnp.zeros((1, H), jnp.float32),
        "ln2_g": jnp.ones((1, H), jnp.float32), "ln2_b": jnp.zeros((1, H), jnp.float32),
        "wp": n(ks[9], (H, H)), "bp": jnp.zeros((1, H), jnp.float32),
        "wc": n(ks[10], (H, NUM_CLASSES)), "bc": jnp.zeros((1, NUM_CLASSES), jnp.float32),
    }


def pack_params(p):
    """Pack params into two dense slabs. Called ONCE after init (hoisted out of
    the per-forward path, per the performance review)."""
    def fuse_heads_w(w):    # (NH, H, HD) -> (H, NH*HD): cols h*HD:(h+1)*HD = w[h]
        return jnp.transpose(w, (1, 0, 2)).reshape(H, NUM_HEADS * HEAD_DIM)

    def fuse_heads_b(b):    # (NH, 1, HD) -> (1, NH*HD)
        return jnp.transpose(b, (1, 0, 2)).reshape(1, NUM_HEADS * HEAD_DIM)

    w_qkv = jnp.concatenate(
        [fuse_heads_w(p["wq"]), fuse_heads_w(p["wk"]), fuse_heads_w(p["wv"])], axis=1)
    b_qkv = jnp.concatenate(
        [fuse_heads_b(p["bq"]), fuse_heads_b(p["bk"]), fuse_heads_b(p["bv"])], axis=1)

    w = jnp.zeros((ROWS_W, LANES), jnp.float32)
    w = w.at[R_WQKV:R_WQKV + H, 0:3 * H].set(w_qkv)
    w = w.at[R_WO:R_WO + H, 0:H].set(p["wo"].reshape(NUM_HEADS * HEAD_DIM, H))
    w = w.at[R_W1:R_W1 + H, 0:FF].set(p["w1"])
    w = w.at[R_W2:R_W2 + FF, 0:H].set(p["w2"])
    w = w.at[R_WP:R_WP + H, 0:H].set(p["wp"])
    w = w.at[R_WC:R_WC + H, 0:NUM_CLASSES].set(p["wc"])

    vec = jnp.zeros((N_VROWS, LANES), jnp.float32)
    vec = vec.at[V_LN0G, 0:H].set(p["ln0_g"][0])
    vec = vec.at[V_LN0B, 0:H].set(p["ln0_b"][0])
    vec = vec.at[V_BQKV, 0:3 * H].set(b_qkv[0])
    vec = vec.at[V_BO, 0:H].set(p["bo"][0])
    vec = vec.at[V_LN1G, 0:H].set(p["ln1_g"][0])
    vec = vec.at[V_LN1B, 0:H].set(p["ln1_b"][0])
    vec = vec.at[V_B1, 0:FF].set(p["b1"][0])
    vec = vec.at[V_B2, 0:H].set(p["b2"][0])
    vec = vec.at[V_LN2G, 0:H].set(p["ln2_g"][0])
    vec = vec.at[V_LN2B, 0:H].set(p["ln2_b"][0])
    vec = vec.at[V_BP, 0:H].set(p["bp"][0])
    vec = vec.at[V_BC, 0:NUM_CLASSES].set(p["bc"][0])

    return {
        "word_emb": p["word_emb"], "pos_emb": p["pos_emb"], "type_emb": p["type_emb"],
        "w_slab": w.astype(jnp.bfloat16),   # MXU operands in bf16 (f32 accumulate)
        "vec_slab": vec,                    # elementwise operands stay f32
    }


# ---------------------------------------------------------------------------
# Forward wrapper: jitted so gather + pallas_call + slice are one executable.
# ---------------------------------------------------------------------------
@jax.jit
def bert_classifier_forward(packed, token_ids, valid_length, segment_ids):
    # TODO(synk): the embedding gather could also move in-kernel (tables fit
    # VMEM trivially); kept in XLA here — jit already fuses it into one dispatch.
    emb = (packed["word_emb"][token_ids.astype(jnp.int32)]
           + packed["pos_emb"][None, :, :]
           + packed["type_emb"][segment_ids.astype(jnp.int32)])
    emb = emb.reshape(B * S, H).astype(jnp.float32)
    valid = valid_length.astype(jnp.int32)                   # (B,) scalars

    logits_slab = pl.pallas_call(
        _bert_classifier_kernel,
        out_shape=jax.ShapeDtypeStruct((B * S, LANES), jnp.float32),
        in_specs=[
            pl.BlockSpec(memory_space=pltpu.MemorySpace.SMEM),   # valid lengths
            pl.BlockSpec((B * S, H), lambda: (0, 0)),            # activations
            pl.BlockSpec((ROWS_W, LANES), lambda: (0, 0)),        # bf16 weight slab
            pl.BlockSpec((N_VROWS, LANES), lambda: (0, 0)),       # f32 vec slab
        ],
        out_specs=pl.BlockSpec((B * S, LANES), lambda: (0, 0)),
    )(valid, emb, packed["w_slab"], packed["vec_slab"])

    # CLS rows sit at b*S; slice the lane-dense slab down to (B, NUM_CLASSES).
    return logits_slab[::S, :NUM_CLASSES]


if __name__ == "__main__":
    key = jax.random.PRNGKey(0)
    k_tok, k_seg, k_par = jax.random.split(key, 3)

    token_ids = jax.random.randint(k_tok, (B, S), 0, VOCAB, dtype=jnp.int32)
    segment_ids = jax.random.randint(k_seg, (B, S), 0, NUM_TYPES, dtype=jnp.int32)
    valid_length = jnp.array([5, 8], dtype=jnp.int32)

    params = init_params(k_par)
    packed = pack_params(params)          # packed ONCE (hoisted out of forward)

    logits = bert_classifier_forward(packed, token_ids, valid_length, segment_ids)
    jax.block_until_ready(logits)

    assert logits.shape == (B, NUM_CLASSES)
    assert bool(jnp.all(jnp.isfinite(logits)))
    print("KERNEL_OK")
</pallas_src>

<mosaic_0001>
module attributes {stable_mosaic.version = 11 : i64} {
  func.func @_bert_classifier_kernel(%arg0: memref<2xi32, #tpu.memory_space<smem>>, %arg1: memref<16x32xf32, #tpu.memory_space<vmem>>, %arg2: memref<224x128xbf16, #tpu.memory_space<vmem>>, %arg3: memref<12x128xf32, #tpu.memory_space<vmem>>, %arg4: memref<16x128xf32, #tpu.memory_space<vmem>>) attributes {dimension_semantics = [], scalar_prefetch = 0 : i64, scratch_operands = 0 : i64, tpu.core_type = #tpu.core_type<tc>} {
    %c0 = arith.constant 0 : index
    %c0_0 = arith.constant 0 : index
    %0 = vector.load %arg3[%c0, %c0_0] : memref<12x128xf32, #tpu.memory_space<vmem>>, vector<1x32xf32>
    %c1 = arith.constant 1 : index
    %c0_1 = arith.constant 0 : index
    %1 = vector.load %arg3[%c1, %c0_1] : memref<12x128xf32, #tpu.memory_space<vmem>>, vector<1x32xf32>
    %c4 = arith.constant 4 : index
    %c0_2 = arith.constant 0 : index
    %2 = vector.load %arg3[%c4, %c0_2] : memref<12x128xf32, #tpu.memory_space<vmem>>, vector<1x32xf32>
    %c5 = arith.constant 5 : index
    %c0_3 = arith.constant 0 : index
    %3 = vector.load %arg3[%c5, %c0_3] : memref<12x128xf32, #tpu.memory_space<vmem>>, vector<1x32xf32>
    %c8 = arith.constant 8 : index
    %c0_4 = arith.constant 0 : index
    %4 = vector.load %arg3[%c8, %c0_4] : memref<12x128xf32, #tpu.memory_space<vmem>>, vector<1x32xf32>
    %c9 = arith.constant 9 : index
    %c0_5 = arith.constant 0 : index
    %5 = vector.load %arg3[%c9, %c0_5] : memref<12x128xf32, #tpu.memory_space<vmem>>, vector<1x32xf32>
    %c2 = arith.constant 2 : index
    %c0_6 = arith.constant 0 : index
    %6 = vector.load %arg3[%c2, %c0_6] : memref<12x128xf32, #tpu.memory_space<vmem>>, vector<1x96xf32>
    %c3 = arith.constant 3 : index
    %c0_7 = arith.constant 0 : index
    %7 = vector.load %arg3[%c3, %c0_7] : memref<12x128xf32, #tpu.memory_space<vmem>>, vector<1x32xf32>
    %c6 = arith.constant 6 : index
    %c0_8 = arith.constant 0 : index
    %8 = vector.load %arg3[%c6, %c0_8] : memref<12x128xf32, #tpu.memory_space<vmem>>, vector<1x64xf32>
    %c7 = arith.constant 7 : index
    %c0_9 = arith.constant 0 : index
    %9 = vector.load %arg3[%c7, %c0_9] : memref<12x128xf32, #tpu.memory_space<vmem>>, vector<1x32xf32>
    %c10 = arith.constant 10 : index
    %c0_10 = arith.constant 0 : index
    %10 = vector.load %arg3[%c10, %c0_10] : memref<12x128xf32, #tpu.memory_space<vmem>>, vector<1x32xf32>
    %c11 = arith.constant 11 : index
    %c0_11 = arith.constant 0 : index
    %11 = vector.load %arg3[%c11, %c0_11] : memref<12x128xf32, #tpu.memory_space<vmem>>, vector<1x128xf32>
    %12 = tpu.iota {dimensions = array<i32: 1>} : vector<2x8xi32>
    %c0_12 = arith.constant 0 : index
    %13 = memref.load %arg0[%c0_12] : memref<2xi32, #tpu.memory_space<smem>>
    %14 = vector.broadcast %13 : i32 to vector<1x8xi32>
    %c1_13 = arith.constant 1 : index
    %15 = memref.load %arg0[%c1_13] : memref<2xi32, #tpu.memory_space<smem>>
    %16 = vector.broadcast %15 : i32 to vector<1x8xi32>
    %17 = tpu.concatenate %14, %16 in 0 : vector<1x8xi32>, vector<1x8xi32> -> vector<2x8xi32>
    %18 = arith.cmpi slt, %12, %17 : vector<2x8xi32>
    %cst = arith.constant 0.000000e+00 : f32
    %cst_14 = arith.constant -1.000000e+09 : f32
    %19 = vector.broadcast %cst : f32 to vector<2x8xf32>
    %20 = vector.broadcast %cst_14 : f32 to vector<2x8xf32>
    %21 = arith.select %18, %19, %20 : vector<2x8xi1>, vector<2x8xf32>
    %22 = tpu.concatenate %21, %21 in 0 : vector<2x8xf32>, vector<2x8xf32> -> vector<4x8xf32>
    %23 = vector.shape_cast %22 : vector<4x8xf32> to vector<4x1x8xf32>
    %c0_15 = arith.constant 0 : index
    %c0_16 = arith.constant 0 : index
    %24 = vector.load %arg1[%c0_15, %c0_16] : memref<16x32xf32, #tpu.memory_space<vmem>>, vector<16x32xf32>
    %cst_17 = arith.constant dense<0.000000e+00> : vector<16xf32>
    %25 = vector.multi_reduction <add>, %24, %cst_17 [1] : vector<16x32xf32> to vector<16xf32>
    %26 = vector.shape_cast %25 : vector<16xf32> to vector<16x1xf32>
    %cst_18 = arith.constant 3.200000e+01 : f32
    %27 = vector.broadcast %cst_18 : f32 to vector<16x1xf32>
    %28 = arith.divf %26, %27 : vector<16x1xf32>
    %29 = vector.broadcast %28 : vector<16x1xf32> to vector<16x32xf32>
    %30 = arith.subf %24, %29 : vector<16x32xf32>
    %31 = arith.mulf %30, %30 : vector<16x32xf32>
    %cst_19 = arith.constant dense<0.000000e+00> : vector<16xf32>
    %32 = vector.multi_reduction <add>, %31, %cst_19 [1] : vector<16x32xf32> to vector<16xf32>
    %33 = vector.shape_cast %32 : vector<16xf32> to vector<16x1xf32>
    %cst_20 = arith.constant 3.200000e+01 : f32
    %34 = vector.broadcast %cst_20 : f32 to vector<16x1xf32>
    %35 = arith.divf %33, %34 : vector<16x1xf32>
    %36 = vector.broadcast %28 : vector<16x1xf32> to vector<16x32xf32>
    %37 = arith.subf %24, %36 : vector<16x32xf32>
    %cst_21 = arith.constant 9.99999996E-13 : f32
    %38 = vector.broadcast %cst_21 : f32 to vector<16x1xf32>
    %39 = arith.addf %35, %38 : vector<16x1xf32>
    %40 = math.rsqrt %39 : vector<16x1xf32>
    %41 = vector.broadcast %40 : vector<16x1xf32> to vector<16x32xf32>
    %42 = arith.mulf %37, %41 : vector<16x32xf32>
    %43 = vector.broadcast %0 : vector<1x32xf32> to vector<16x32xf32>
    %44 = arith.mulf %42, %43 : vector<16x32xf32>
    %45 = vector.broadcast %1 : vector<1x32xf32> to vector<16x32xf32>
    %46 = arith.addf %44, %45 : vector<16x32xf32>
    %47 = arith.truncf %46 : vector<16x32xf32> to vector<16x32xbf16>
    %c0_22 = arith.constant 0 : index
    %c0_23 = arith.constant 0 : index
    %48 = vector.load %arg2[%c0_22, %c0_23] : memref<224x128xbf16, #tpu.memory_space<vmem>>, vector<32x96xbf16>
    %cst_24 = arith.constant dense<0.000000e+00> : vector<16x96xf32>
    %49 = tpu.matmul %47, %48, %cst_24 {dimension_numbers = #tpu.dot_dimension_numbers<[1], [0], [0], [1], [0, 0, 1, 1], [], []>} : vector<16x32xbf16>, vector<32x96xbf16>, vector<16x96xf32> -> vector<16x96xf32>
    %50 = vector.broadcast %6 : vector<1x96xf32> to vector<16x96xf32>
    %51 = arith.addf %49, %50 : vector<16x96xf32>
    %52 = vector.extract_strided_slice %51 {offsets = [0, 0], sizes = [16, 32], strides = [1, 1]} : vector<16x96xf32> to vector<16x32xf32>
    %53 = vector.extract_strided_slice %52 {offsets = [0, 0], sizes = [16, 16], strides = [1, 1]} : vector<16x32xf32> to vector<16x16xf32>
    %54 = vector.extract_strided_slice %52 {offsets = [0, 16], sizes = [16, 16], strides = [1, 1]} : vector<16x32xf32> to vector<16x16xf32>
    %55 = tpu.concatenate %53, %54 in 0 : vector<16x16xf32>, vector<16x16xf32> -> vector<32x16xf32>
    %56 = vector.shape_cast %55 : vector<32x16xf32> to vector<4x8x16xf32>
    %57 = vector.extract_strided_slice %51 {offsets = [0, 32], sizes = [16, 32], strides = [1, 1]} : vector<16x96xf32> to vector<16x32xf32>
    %58 = vector.extract_strided_slice %57 {offsets = [0, 0], sizes = [16, 16], strides = [1, 1]} : vector<16x32xf32> to vector<16x16xf32>
    %59 = vector.extract_strided_slice %57 {offsets = [0, 16], sizes = [16, 16], strides = [1, 1]} : vector<16x32xf32> to vector<16x16xf32>
    %60 = tpu.concatenate %58, %59 in 0 : vector<16x16xf32>, vector<16x16xf32> -> vector<32x16xf32>
    %61 = vector.shape_cast %60 : vector<32x16xf32> to vector<4x8x16xf32>
    %62 = vector.extract_strided_slice %51 {offsets = [0, 64], sizes = [16, 32], strides = [1, 1]} : vector<16x96xf32> to vector<16x32xf32>
    %63 = vector.extract_strided_slice %62 {offsets = [0, 0], sizes = [16, 16], strides = [1, 1]} : vector<16x32xf32> to vector<16x16xf32>
    %64 = vector.extract_strided_slice %62 {offsets = [0, 16], sizes = [16, 16], strides = [1, 1]} : vector<16x32xf32> to vector<16x16xf32>
    %65 = tpu.concatenate %63, %64 in 0 : vector<16x16xf32>, vector<16x16xf32> -> vector<32x16xf32>
    %66 = vector.shape_cast %65 : vector<32x16xf32> to vector<4x8x16xf32>
    %67 = arith.truncf %56 : vector<4x8x16xf32> to vector<4x8x16xbf16>
    %68 = arith.truncf %61 : vector<4x8x16xf32> to vector<4x8x16xbf16>
    "tpu.trace_start"() <{level = 10 : i32, message = "nqd,nkd->nqk"}> : () -> ()
    %cst_25 = arith.constant dense<0.000000e+00> : vector<4x8x8xf32>
    %69 = tpu.matmul %67, %68, %cst_25 {dimension_numbers = #tpu.dot_dimension_numbers<[2], [2], [1], [1], [0, 0, 0, 1, 1, 1], [0], [0]>} : vector<4x8x16xbf16>, vector<4x8x16xbf16>, vector<4x8x8xf32> -> vector<4x8x8xf32>
    "tpu.trace_stop"() : () -> ()
    %cst_26 = arith.constant 2.500000e-01 : f32
    %70 = vector.broadcast %cst_26 : f32 to vector<4x8x8xf32>
    %71 = arith.mulf %69, %70 : vector<4x8x8xf32>
    %72 = vector.broadcast %23 : vector<4x1x8xf32> to vector<4x8x8xf32>
    %73 = arith.addf %71, %72 : vector<4x8x8xf32>
    %cst_27 = arith.constant dense<0xFF800000> : vector<4x8xf32>
    %74 = vector.multi_reduction <maximumf>, %73, %cst_27 [2] : vector<4x8x8xf32> to vector<4x8xf32>
    %75 = vector.shape_cast %74 : vector<4x8xf32> to vector<4x8x1xf32>
    %76 = vector.broadcast %75 : vector<4x8x1xf32> to vector<4x8x8xf32>
    %77 = arith.subf %73, %76 : vector<4x8x8xf32>
    %78 = math.exp %77 : vector<4x8x8xf32>
    %cst_28 = arith.constant dense<0.000000e+00> : vector<4x8xf32>
    %79 = vector.multi_reduction <add>, %78, %cst_28 [2] : vector<4x8x8xf32> to vector<4x8xf32>
    %80 = vector.shape_cast %79 : vector<4x8xf32> to vector<4x8x1xf32>
    %81 = tpu.reciprocal %80 {approx = true} : vector<4x8x1xf32> -> vector<4x8x1xf32>
    %82 = vector.broadcast %81 : vector<4x8x1xf32> to vector<4x8x8xf32>
    %83 = arith.mulf %78, %82 : vector<4x8x8xf32>
    %84 = arith.truncf %83 : vector<4x8x8xf32> to vector<4x8x8xbf16>
    %85 = arith.truncf %66 : vector<4x8x16xf32> to vector<4x8x16xbf16>
    "tpu.trace_start"() <{level = 10 : i32, message = "nqk,nkd->nqd"}> : () -> ()
    %cst_29 = arith.constant dense<0.000000e+00> : vector<4x8x16xf32>
    %86 = tpu.matmul %84, %85, %cst_29 {dimension_numbers = #tpu.dot_dimension_numbers<[2], [1], [1], [2], [0, 0, 0, 1, 1, 2], [0], [0]>} : vector<4x8x8xbf16>, vector<4x8x16xbf16>, vector<4x8x16xf32> -> vector<4x8x16xf32>
    "tpu.trace_stop"() : () -> ()
    %87 = vector.shape_cast %86 : vector<4x8x16xf32> to vector<2x16x16xf32>
    %88 = vector.extract_strided_slice %87 {offsets = [0, 0, 0], sizes = [1, 16, 16], strides = [1, 1, 1]} : vector<2x16x16xf32> to vector<1x16x16xf32>
    %89 = vector.shape_cast %88 : vector<1x16x16xf32> to vector<16x16xf32>
    %90 = vector.extract_strided_slice %87 {offsets = [1, 0, 0], sizes = [1, 16, 16], strides = [1, 1, 1]} : vector<2x16x16xf32> to vector<1x16x16xf32>
    %91 = vector.shape_cast %90 : vector<1x16x16xf32> to vector<16x16xf32>
    %92 = tpu.concatenate %89, %91 in 1 : vector<16x16xf32>, vector<16x16xf32> -> vector<16x32xf32>
    %93 = arith.truncf %92 : vector<16x32xf32> to vector<16x32xbf16>
    %c32 = arith.constant 32 : index
    %c0_30 = arith.constant 0 : index
    %94 = vector.load %arg2[%c32, %c0_30] : memref<224x128xbf16, #tpu.memory_space<vmem>>, vector<32x32xbf16>
    %cst_31 = arith.constant dense<0.000000e+00> : vector<16x32xf32>
    %95 = tpu.matmul %93, %94, %cst_31 {dimension_numbers = #tpu.dot_dimension_numbers<[1], [0], [0], [1], [0, 0, 1, 1], [], []>} : vector<16x32xbf16>, vector<32x32xbf16>, vector<16x32xf32> -> vector<16x32xf32>
    %96 = vector.broadcast %7 : vector<1x32xf32> to vector<16x32xf32>
    %97 = arith.addf %95, %96 : vector<16x32xf32>
    %98 = arith.addf %46, %97 : vector<16x32xf32>
    %cst_32 = arith.constant dense<0.000000e+00> : vector<16xf32>
    %99 = vector.multi_reduction <add>, %98, %cst_32 [1] : vector<16x32xf32> to vector<16xf32>
    %100 = vector.shape_cast %99 : vector<16xf32> to vector<16x1xf32>
    %cst_33 = arith.constant 3.200000e+01 : f32
    %101 = vector.broadcast %cst_33 : f32 to vector<16x1xf32>
    %102 = arith.divf %100, %101 : vector<16x1xf32>
    %103 = vector.broadcast %102 : vector<16x1xf32> to vector<16x32xf32>
    %104 = arith.subf %98, %103 : vector<16x32xf32>
    %105 = arith.mulf %104, %104 : vector<16x32xf32>
    %cst_34 = arith.constant dense<0.000000e+00> : vector<16xf32>
    %106 = vector.multi_reduction <add>, %105, %cst_34 [1] : vector<16x32xf32> to vector<16xf32>
    %107 = vector.shape_cast %106 : vector<16xf32> to vector<16x1xf32>
    %cst_35 = arith.constant 3.200000e+01 : f32
    %108 = vector.broadcast %cst_35 : f32 to vector<16x1xf32>
    %109 = arith.divf %107, %108 : vector<16x1xf32>
    %110 = vector.broadcast %102 : vector<16x1xf32> to vector<16x32xf32>
    %111 = arith.subf %98, %110 : vector<16x32xf32>
    %cst_36 = arith.constant 9.99999996E-13 : f32
    %112 = vector.broadcast %cst_36 : f32 to vector<16x1xf32>
    %113 = arith.addf %109, %112 : vector<16x1xf32>
    %114 = math.rsqrt %113 : vector<16x1xf32>
    %115 = vector.broadcast %114 : vector<16x1xf32> to vector<16x32xf32>
    %116 = arith.mulf %111, %115 : vector<16x32xf32>
    %117 = vector.broadcast %2 : vector<1x32xf32> to vector<16x32xf32>
    %118 = arith.mulf %116, %117 : vector<16x32xf32>
    %119 = vector.broadcast %3 : vector<1x32xf32> to vector<16x32xf32>
    %120 = arith.addf %118, %119 : vector<16x32xf32>
    %121 = arith.truncf %120 : vector<16x32xf32> to vector<16x32xbf16>
    %c64 = arith.constant 64 : index
    %c0_37 = arith.constant 0 : index
    %122 = vector.load %arg2[%c64, %c0_37] : memref<224x128xbf16, #tpu.memory_space<vmem>>, vector<32x64xbf16>
    %cst_38 = arith.constant dense<0.000000e+00> : vector<16x64xf32>
    %123 = tpu.matmul %121, %122, %cst_38 {dimension_numbers = #tpu.dot_dimension_numbers<[1], [0], [0], [1], [0, 0, 1, 1], [], []>} : vector<16x32xbf16>, vector<32x64xbf16>, vector<16x64xf32> -> vector<16x64xf32>
    %124 = vector.broadcast %8 : vector<1x64xf32> to vector<16x64xf32>
    %125 = arith.addf %123, %124 : vector<16x64xf32>
    %126 = arith.mulf %125, %125 : vector<16x64xf32>
    %127 = arith.mulf %125, %126 : vector<16x64xf32>
    %cst_39 = arith.constant 4.471500e-02 : f32
    %128 = vector.broadcast %cst_39 : f32 to vector<16x64xf32>
    %129 = arith.mulf %128, %127 : vector<16x64xf32>
    %130 = arith.addf %125, %129 : vector<16x64xf32>
    %cst_40 = arith.constant 0.797884583 : f32
    %131 = vector.broadcast %cst_40 : f32 to vector<16x64xf32>
    %132 = arith.mulf %131, %130 : vector<16x64xf32>
    %133 = math.tanh %132 : vector<16x64xf32>
    %cst_41 = arith.constant 1.000000e+00 : f32
    %134 = vector.broadcast %cst_41 : f32 to vector<16x64xf32>
    %135 = arith.addf %134, %133 : vector<16x64xf32>
    %cst_42 = arith.constant 5.000000e-01 : f32
    %136 = vector.broadcast %cst_42 : f32 to vector<16x64xf32>
    %137 = arith.mulf %136, %135 : vector<16x64xf32>
    %138 = arith.mulf %125, %137 : vector<16x64xf32>
    %139 = arith.truncf %138 : vector<16x64xf32> to vector<16x64xbf16>
    %c96 = arith.constant 96 : index
    %c0_43 = arith.constant 0 : index
    %140 = vector.load %arg2[%c96, %c0_43] : memref<224x128xbf16, #tpu.memory_space<vmem>>, vector<64x32xbf16>
    %cst_44 = arith.constant dense<0.000000e+00> : vector<16x32xf32>
    %141 = tpu.matmul %139, %140, %cst_44 {dimension_numbers = #tpu.dot_dimension_numbers<[1], [0], [0], [1], [0, 0, 1, 1], [], []>} : vector<16x64xbf16>, vector<64x32xbf16>, vector<16x32xf32> -> vector<16x32xf32>
    %142 = vector.broadcast %9 : vector<1x32xf32> to vector<16x32xf32>
    %143 = arith.addf %141, %142 : vector<16x32xf32>
    %144 = arith.addf %120, %143 : vector<16x32xf32>
    %cst_45 = arith.constant dense<0.000000e+00> : vector<16xf32>
    %145 = vector.multi_reduction <add>, %144, %cst_45 [1] : vector<16x32xf32> to vector<16xf32>
    %146 = vector.shape_cast %145 : vector<16xf32> to vector<16x1xf32>
    %cst_46 = arith.constant 3.200000e+01 : f32
    %147 = vector.broadcast %cst_46 : f32 to vector<16x1xf32>
    %148 = arith.divf %146, %147 : vector<16x1xf32>
    %149 = vector.broadcast %148 : vector<16x1xf32> to vector<16x32xf32>
    %150 = arith.subf %144, %149 : vector<16x32xf32>
    %151 = arith.mulf %150, %150 : vector<16x32xf32>
    %cst_47 = arith.constant dense<0.000000e+00> : vector<16xf32>
    %152 = vector.multi_reduction <add>, %151, %cst_47 [1] : vector<16x32xf32> to vector<16xf32>
    %153 = vector.shape_cast %152 : vector<16xf32> to vector<16x1xf32>
    %cst_48 = arith.constant 3.200000e+01 : f32
    %154 = vector.broadcast %cst_48 : f32 to vector<16x1xf32>
    %155 = arith.divf %153, %154 : vector<16x1xf32>
    %156 = vector.broadcast %148 : vector<16x1xf32> to vector<16x32xf32>
    %157 = arith.subf %144, %156 : vector<16x32xf32>
    %cst_49 = arith.constant 9.99999996E-13 : f32
    %158 = vector.broadcast %cst_49 : f32 to vector<16x1xf32>
    %159 = arith.addf %155, %158 : vector<16x1xf32>
    %160 = math.rsqrt %159 : vector<16x1xf32>
    %161 = vector.broadcast %160 : vector<16x1xf32> to vector<16x32xf32>
    %162 = arith.mulf %157, %161 : vector<16x32xf32>
    %163 = vector.broadcast %4 : vector<1x32xf32> to vector<16x32xf32>
    %164 = arith.mulf %162, %163 : vector<16x32xf32>
    %165 = vector.broadcast %5 : vector<1x32xf32> to vector<16x32xf32>
    %166 = arith.addf %164, %165 : vector<16x32xf32>
    %167 = arith.truncf %166 : vector<16x32xf32> to vector<16x32xbf16>
    %c160 = arith.constant 160 : index
    %c0_50 = arith.constant 0 : index
    %168 = vector.load %arg2[%c160, %c0_50] : memref<224x128xbf16, #tpu.memory_space<vmem>>, vector<32x32xbf16>
    %cst_51 = arith.constant dense<0.000000e+00> : vector<16x32xf32>
    %169 = tpu.matmul %167, %168, %cst_51 {dimension_numbers = #tpu.dot_dimension_numbers<[1], [0], [0], [1], [0, 0, 1, 1], [], []>} : vector<16x32xbf16>, vector<32x32xbf16>, vector<16x32xf32> -> vector<16x32xf32>
    %170 = vector.broadcast %10 : vector<1x32xf32> to vector<16x32xf32>
    %171 = arith.addf %169, %170 : vector<16x32xf32>
    %172 = math.tanh %171 : vector<16x32xf32>
    %173 = arith.truncf %172 : vector<16x32xf32> to vector<16x32xbf16>
    %c192 = arith.constant 192 : index
    %c0_52 = arith.constant 0 : index
    %174 = vector.load %arg2[%c192, %c0_52] : memref<224x128xbf16, #tpu.memory_space<vmem>>, vector<32x128xbf16>
    %cst_53 = arith.constant dense<0.000000e+00> : vector<16x128xf32>
    %175 = tpu.matmul %173, %174, %cst_53 {dimension_numbers = #tpu.dot_dimension_numbers<[1], [0], [0], [1], [0, 0, 1, 1], [], []>} : vector<16x32xbf16>, vector<32x128xbf16>, vector<16x128xf32> -> vector<16x128xf32>
    %176 = vector.broadcast %11 : vector<1x128xf32> to vector<16x128xf32>
    %177 = arith.addf %175, %176 : vector<16x128xf32>
    %c0_54 = arith.constant 0 : index
    %c0_55 = arith.constant 0 : index
    %178 = vector.load %arg4[%c0_54, %c0_55] : memref<16x128xf32, #tpu.memory_space<vmem>>, vector<16x128xf32>
    tpu.vector_store %arg4[%c0_54, %c0_55], %177 {strides = array<i32>} : memref<16x128xf32, #tpu.memory_space<vmem>>, vector<16x128xf32>,
    return
  }
}

</mosaic_0001>

<bundles_post_ra>
// kernel: bert_classifier_forward.1
= control target key start
LH: loop header
LB: loop body
LE: loop exit
PB: predicated region body
PF: predicated region fallthrough
CT: control target
= control target key end

     0   :  { %9 = vsyncpa [#allocation3], 0  ;;  %s910_s18 = smov [#allocation2]   ;;  %s1116_s0 = inlined_call_operand.vmem [shape: s32[2], index: 0, kind: input, shape index: {}]   ;;  %s1117_s1 = inlined_call_operand.vmem [shape: f32[16,32], index: 1, kind: input, shape index: {}]   ;;  %s1118_s2 = inlined_call_operand.vmem [shape: bf16[224,128], index: 2, kind: input, shape index: {}]   ;;  %s1119_s3 = inlined_call_operand.vmem [shape: f32[12,128], index: 3, kind: input, shape index: {}]   ;;  %s1120_s4 = inlined_call_operand.vmem [shape: f32[16,128], index: 4, kind: output, shape index: {}]  }
   0x1   :  { %s15_s17 = sshll.u32 %s1116_s0, 4  ;;  %s16_s17 = int_to_ptr.vmem [resolvable:$true] %s15_s17 }
   0x2   :  { %18 = dma.vmem_to_smem %s16_s17, 16, %s910_s18, [#allocation3]  }
   0x3   :  { %908 = dma.done.wait [#allocation3], 16  }
   0x4   :  { %909 = vsyncadd [#allocation3], 4294967280 }
   0x5   :  { %29 = sfence }
   0x6   :  { %v62_v0 = vld [vmem:[%s1117_s1] sm:$0xff]  ;;  %vm64_vm0 = vcmask 261120   ;;  %v63_v2 = vld [vmem:[%s1117_s1 + $0x8] sm:$0xff]  ;;  %v911_v4 = vmov 32.0   ;;  %s912_s5 = smov 112   ;;  %s913_s6 = smov 96  }
   0x7   :  { %v65_v1 = vsel %vm64_vm0, %v62_v0, 0.0  ;;  %v68_v3 = vsel %vm64_vm0, %v63_v2, 0.0  ;;  %858 = vrcp.f32 %v911_v4  ;;  %v821_v21 = vld [vmem:[%s1118_s2 + $0x8] sm:$0xff]  ;;  %v820_v23 = vld [vmem:[%s1118_s2] sm:$0xff]  ;;  %vm174_vm8 = vcmask 130048   ;;  %s45_s7 = sld [smem:[#allocation2]] }
   0x8   :  { %66 = vadd.xlane.f32.xlu0 %v65_v1  ;;  %149 = vmatpush.bf16.msra.mxu0 %v821_v21  ;;  %v846_v42 = vld [vmem:[%s1119_s3] ss:$0 sm:$0xff]  ;;  %v847_v47 = vld [vmem:[%s1119_s3 + $0x1] ss:$0 sm:$0xff]  ;;  %v848_v52 = vld [vmem:[%s1119_s3 + $0x2] ss:$0 sm:$0xff] }
   0x9   :  { %s749_s8 = sld [smem:[#allocation2 + $0x1]]  ;;  %vm49_vm9 = vcmask 1040384   ;;  %v914_v21 = vmov -1e+09   ;;  %vm56_vm11 = vcmask 1041408   ;;  %vm282_vm12 = vcmask 64512  }
   0xa   :  { %s915_s9 = smov 64   ;;  %vm336_vm13 = vcmask 1043456   ;;  %s916_s12 = smov 16  }
   0xc   :  { %150 = vmatpush.bf16.msra.mxu0 %v820_v23 }
   0xd   :  { %v859_v5 = vpop.eup %858 }
   0xe   :  { %v72_v6 = vmul.f32 32.0, %v859_v5  ;;  %vm76_vm1 = vweird.f32 %v859_v5 }
  0x10   :  { %69 = vadd.xlane.f32.xlu0 %v68_v3  ;;  %v73_v7 = vsub.f32 1.0, %v72_v6 }
  0x12   :  { %v74_v8 = vmul.f32 %v859_v5, %v73_v7 }
  0x14   :  { %v75_v9 = vadd.f32 %v859_v5, %v74_v8 }
  0x16   :  { %v953_v10 = vsel %vm76_vm1, %v859_v5, %v75_v9 }
  0x7b   :  { %v67_v11 = vpop.xlane.xlu0 %66 }
  0x7c   :  { %v78_v12 = vmul.f32 %v953_v10, %v67_v11 }
  0x7e   :  { %v80_v13 = vsub.f32 %v62_v0, %v78_v12 }
  0x80   :  { %v82_v14 = vmul.f32 %v80_v13, %v80_v13 }
  0x82   :  { %v84_v15 = vsel %vm64_vm0, %v82_v14, 0.0 }
  0x83   :  { %85 = vadd.xlane.f32.xlu1 %v84_v15  ;;  %v70_v16 = vpop.xlane.xlu0 %69 }
  0x84   :  { %v79_v17 = vmul.f32 %v953_v10, %v70_v16  ;;  %v43_v16 = vlaneseq }
  0x86   :  { %v81_v18 = vsub.f32 %v63_v2, %v79_v17  ;;  %v46_v17 = vstv %s45_s7 }
  0x88   :  { %v83_v19 = vmul.f32 %v81_v18, %v81_v18 }
  0x8a   :  { %v87_v20 = vsel %vm64_vm0, %v83_v19, 0.0  ;;  %v44_v19 = vand.u32 127, %v43_v16 }
  0x8b   :  { %88 = vadd.xlane.f32.xlu1 %v87_v20 }
  0xf6   :  { %v86_v22 = vpop.xlane.xlu1 %85 }
  0xf7   :  { %v90_v24 = vmul.f32 %v86_v22, %v953_v10 }
  0xf9   :  { %v92_v25 = vadd.f32 1e-12, %v90_v24 }
  0xfb   :  { %860 = vrsqrt.f32 %v92_v25  ;;  %vm100_vm3 = vweird.f32 %v92_v25 }
  0xfe   :  { %v89_v26 = vpop.xlane.xlu1 %88 }
  0xff   :  { %v91_v27 = vmul.f32 %v89_v26, %v953_v10 }
 0x101   :  { %v861_v28 = vpop.eup %860  ;;  %v93_v29 = vadd.f32 1e-12, %v91_v27 }
 0x102   :  { %v95_v30 = vmul.f32 %v861_v28, %v92_v25  ;;  %vm101_vm2 = vweird.f32 %v861_v28 }
 0x103   :  { %862 = vrsqrt.f32 %v93_v29  ;;  %vm102_vm4 = vmor %vm100_vm3, %vm101_vm2  ;;  %vm110_vm6 = vweird.f32 %v93_v29 }
 0x104   :  { %v96_v31 = vmul.f32 %v861_v28, %v95_v30 }
 0x106   :  { %v97_v32 = vmul.f32 0.5, %v96_v31 }
 0x108   :  { %v98_v33 = vsub.f32 1.5, %v97_v32 }
 0x109   :  { %v863_v34 = vpop.eup %862 }
 0x10a   :  { %v99_v35 = vmul.f32 %v861_v28, %v98_v33  ;;  %v105_v36 = vmul.f32 %v863_v34, %v93_v29  ;;  %vm111_vm5 = vweird.f32 %v863_v34 }
 0x10b   :  { %vm112_vm7 = vmor %vm110_vm6, %vm111_vm5  ;;  %vm600_vm5 = vcmask 523264  }
 0x10c   :  { %v106_v37 = vmul.f32 %v863_v34, %v105_v36  ;;  %v103_v38 = vsel %vm102_vm4, %v861_v28, %v99_v35 }
 0x10d   :  { %v114_v41 = vmul.f32 %v103_v38, %v80_v13 }
 0x10e   :  { %v107_v39 = vmul.f32 0.5, %v106_v37 }
 0x10f   :  { %v117_v46 = vmul.f32 %v846_v42, %v114_v41 }
 0x110   :  { %v108_v40 = vsub.f32 1.5, %v107_v39 }
 0x111   :  { %v973_v49 = vadd.f32 %v847_v47, %v117_v46 }
 0x112   :  { %v109_v43 = vmul.f32 %v863_v34, %v108_v40 }
 0x114   :  { %v113_v44 = vsel %vm112_vm7, %v863_v34, %v109_v43 }
 0x115   :  { %v115_v45 = vmul.f32 %v113_v44, %v81_v18  ;;  %v48_v18 = vstv %s749_s8 }
 0x116   :  { %v50_v20 = vsel %vm49_vm9, %v46_v17, %v48_v18 }
 0x117   :  { %v118_v48 = vmul.f32 %v846_v42, %v115_v45  ;;  %vm51_vm10 = vcmp.lt.s32.totalorder %v44_v19, %v50_v20 }
 0x118   :  { %v52_v22 = vsel %vm51_vm10, 0.0, %v914_v21 }
 0x119   :  { %v975_v50 = vadd.f32 %v847_v47, %v118_v48  ;;  %v54_v23 = vrot.slane %v52_v22, 6 }
 0x11b   :  { %v122_v51 = vpack.c.bf16 %v975_v50, %v973_v49  ;;  %v57_v24 = vsel %vm56_vm11, %v52_v22, %v54_v23 }
 0x11c   :  { %v59_v25 = vrot.slane %v57_v24, 1  ;;  %v60_v34 = vrot.slane %v57_v24, 2  ;;  %v61_v35 = vrot.slane %v57_v24, 3  ;;  %v270_v46 = vperm.slane %v57_v24, 0 }
 0x11d   :  { %758 = vmatmul.msk.bf16.vlgmr.msra.gmra.mxu0 %vm64_vm0, %v122_v51 }
 0x11e   :  { %v271_v26 = vperm.slane %v59_v25, 0  ;;  %v272_v36 = vperm.slane %v60_v34, 0  ;;  %v273_v39 = vperm.slane %v61_v35, 0  ;;  %v823_v35 = vld [vmem:[%s1118_s2 + $0x18] sm:$0xff] }
 0x19a   :  { %v152_v53 = vpop.f32.mrf.mxu0 }
 0x19b   :  { %v153_v54 = vadd.f32 %v848_v52, %v152_v53 }
 0x19d   :  { %159 = vrot.lane.b32.xlu2 %v153_v54, %s912_s5  ;;  %v165_v59 = vpack.c.bf16 %v153_v54, %v153_v54 }
 0x19f   :  { %v170_v61 = vunpack.c.l.b16 %v165_v59 }
 0x1a1   :  { %v986_v62 = vpack.c.b16 %v170_v61, %v170_v61 }
 0x1a2   :  { %v154_v55 = vpop.f32.mrf.mxu0 }
 0x1a3   :  { %v155_v56 = vadd.f32 %v848_v52, %v154_v55 }
 0x1a5   :  { %v166_v57 = vpack.c.bf16 %v155_v56, %v155_v56  ;;  %161 = vrot.lane.b32.xlu2 %v155_v56, %s912_s5 }
 0x1a7   :  { %v195_v58 = vunpack.c.l.b16 %v166_v57 }
 0x1a9   :  { %v983_v60 = vpack.c.b16 %v195_v58, %v195_v58 }
 0x1ad   :  { %197 = vrot.lane.b32.xlu2 %v983_v60, %s913_s6 }
 0x1b5   :  { %172 = vrot.lane.b32.xlu2 %v986_v62, %s913_s6 }
 0x1f7   :  { %v160_v63 = vpop.permute.xlu2 %159 }
 0x1f8   :  { %v167_v0 = vpack.c.bf16 %v160_v63, %v160_v63 }
 0x1fa   :  { %v219_v1 = vunpack.c.l.b16 %v167_v0 }
 0x1fc   :  { %v220_v2 = vpack.c.b16 %v219_v1, %v219_v1 }
 0x1fe   :  { %221 = vrot.lane.b32.xlu0 %v220_v2, %s913_s6 }
 0x1ff   :  { %v162_v3 = vpop.permute.xlu2 %161 }
 0x200   :  { %v168_v4 = vpack.c.bf16 %v162_v3, %v162_v3 }
 0x202   :  { %v243_v5 = vunpack.c.l.b16 %v168_v4 }
 0x204   :  { %v989_v6 = vpack.c.b16 %v243_v5, %v243_v5 }
 0x206   :  { %245 = vrot.lane.b32.xlu1 %v989_v6, %s913_s6 }
 0x207   :  { %v198_v7 = vpop.permute.xlu2 %197 }
 0x208   :  { %v203_v8 = vsel %vm174_vm8, %v198_v7, 0 }
 0x209   :  { %212 = vmatpush.bf16.xpose.msra.mxu2 %v203_v8 }
 0x20f   :  { %v173_v9 = vpop.permute.xlu2 %172 }
 0x210   :  { %760 = vmatmul.msk.bf16.vlgmr.msra.gmra.mxu2 %vm174_vm8, %v166_v57  ;;  %v179_v11 = vsel %vm174_vm8, %v173_v9, 0 }
 0x211   :  { %188 = vmatpush.bf16.xpose.msra.mxu1 %v179_v11 }
 0x218   :  { %759 = vmatmul.msk.bf16.vlgmr.msra.gmra.mxu1 %vm174_vm8, %v165_v59 }
 0x270   :  { %v222_v12 = vpop.permute.xlu0 %221 }
 0x271   :  { %v227_v13 = vsel %vm174_vm8, %v222_v12, 0 }
 0x272   :  { %236 = vmatpush.bf16.xpose.msra.mxu3 %v227_v13 }
 0x278   :  { %v246_v14 = vpop.permute.xlu1 %245 }
 0x279   :  { %761 = vmatmul.msk.bf16.vlgmr.msra.gmra.mxu3 %vm174_vm8, %v167_v0  ;;  %v251_v15 = vsel %vm174_vm8, %v246_v14, 0 }
 0x27a   :  { %260 = vmatpush.bf16.xpose.msrb.mxu0 %v251_v15 }
 0x281   :  { %762 = vmatmul.msk.bf16.vlgmr.msrb.gmra.mxu0 %vm174_vm8, %v168_v4 }
 0x293   :  { %v214_v27 = vpop.f32.mrf.mxu2 }
 0x294   :  { %v267_v28 = vmul.f32 0.25, %v214_v27 }
 0x295   :  { %v190_v29 = vpop.f32.mrf.mxu1 }
 0x296   :  { %v279_v30 = vadd.f32 %v271_v26, %v267_v28  ;;  %v266_v43 = vmul.f32 0.25, %v190_v29 }
 0x298   :  { %v286_v31 = vsel %vm282_vm12, %v279_v30, -inf  ;;  %v278_v51 = vadd.f32 %v270_v46, %v266_v43 }
 0x299   :  { %287 = vmax.xlane.f32.xlu1 %v286_v31 }
 0x29a   :  { %v283_v53 = vsel %vm282_vm12, %v278_v51, -inf }
 0x29b   :  { %v216_v32 = vpop.f32.mrf.mxu2 }
 0x29d   :  { %v192_v33 = vpop.f32.mrf.mxu1 }
 0x2b2   :  { %374 = vrot.lane.b32.xlu1 %v220_v2, %s915_s9 }
 0x2fc   :  { %v238_v37 = vpop.f32.mrf.mxu3 }
 0x2fd   :  { %v268_v38 = vmul.f32 0.25, %v238_v37 }
 0x2fe   :  { %v262_v40 = vpop.f32.mrf.mxu0 }
 0x2ff   :  { %v269_v41 = vmul.f32 0.25, %v262_v40  ;;  %v280_v42 = vadd.f32 %v272_v36, %v268_v38 }
 0x301   :  { %v289_v44 = vsel %vm282_vm12, %v280_v42, -inf  ;;  %v281_v45 = vadd.f32 %v273_v39, %v269_v41 }
 0x302   :  { %290 = vmax.xlane.f32.xlu2 %v289_v44 }
 0x303   :  { %v292_v47 = vsel %vm282_vm12, %v281_v45, -inf }
 0x304   :  { %v240_v48 = vpop.f32.mrf.mxu3  ;;  %293 = vmax.xlane.f32.xlu0 %v292_v47 }
 0x306   :  { %v264_v52 = vpop.f32.mrf.mxu0 }
 0x30a   :  { %284 = vmax.xlane.f32.xlu2 %v283_v53 }
 0x30c   :  { %v288_v54 = vpop.xlane.xlu1 %287 }
 0x30d   :  { %v296_v55 = vsub.f32 %v279_v30, %v288_v54  ;;  %v849_v54 = vld [vmem:[%s1119_s3 + $0x3] ss:$0 sm:$0xff] }
 0x30f   :  { %v301_v56 = vmul.f32 1.442695, %v296_v55 }
 0x311   :  { %864 = vpow2.f32 %v301_v56 }
 0x317   :  { %v865_v57 = vpop.eup %864 }
 0x318   :  { %v310_v58 = vsel %vm282_vm12, %v865_v57, 0.0 }
 0x319   :  { %311 = vadd.xlane.f32.xlu2 %v310_v58 }
 0x324   :  { %v375_v59 = vpop.permute.xlu1 %374 }
 0x325   :  { %v380_v61 = vsel %vm336_vm13, %v375_v59, 0 }
 0x326   :  { %389 = vmatpush.bf16.msrb.mxu3 %v380_v61 }
 0x375   :  { %v291_v63 = vpop.xlane.xlu2 %290 }
 0x376   :  { %v297_v0 = vsub.f32 %v280_v42, %v291_v63 }
 0x377   :  { %v294_v2 = vpop.xlane.xlu0 %293 }
 0x378   :  { %v303_v1 = vmul.f32 1.442695, %v297_v0  ;;  %v298_v7 = vsub.f32 %v281_v45, %v294_v2  ;;  %v822_v45 = vld [vmem:[%s1118_s2 + $0x10] sm:$0xff] }
 0x37a   :  { %866 = vpow2.f32 %v303_v1  ;;  %v305_v11 = vmul.f32 1.442695, %v298_v7 }
 0x37d   :  { %v285_v3 = vpop.xlane.xlu2 %284 }
 0x37e   :  { %v295_v4 = vsub.f32 %v278_v51, %v285_v3 }
 0x380   :  { %v867_v5 = vpop.eup %866  ;;  %v299_v8 = vmul.f32 1.442695, %v295_v4 }
 0x381   :  { %v313_v9 = vsel %vm282_vm12, %v867_v5, 0.0 }
 0x382   :  { %868 = vpow2.f32 %v299_v8  ;;  %314 = vadd.xlane.f32.xlu0 %v313_v9 }
 0x383   :  { %870 = vpow2.f32 %v305_v11 }
 0x388   :  { %v869_v12 = vpop.eup %868 }
 0x389   :  { %v307_v13 = vsel %vm282_vm12, %v869_v12, 0.0  ;;  %v871_v14 = vpop.eup %870 }
 0x38a   :  { %308 = vadd.xlane.f32.xlu2 %v307_v13  ;;  %v316_v15 = vsel %vm282_vm12, %v871_v14, 0.0 }
 0x38c   :  { %v312_v16 = vpop.xlane.xlu2 %311 }
 0x392   :  { %317 = vadd.xlane.f32.xlu2 %v316_v15 }
 0x396   :  { %395 = vrot.lane.b32.xlu0 %v989_v6, %s915_s9 }
 0x39e   :  { %331 = vrot.lane.b32.xlu0 %v986_v62, %s915_s9 }
 0x3aa   :  { %353 = vrot.lane.b32.xlu2 %v983_v60, %s915_s9 }
 0x3f5   :  { %v315_v17 = vpop.xlane.xlu0 %314 }
 0x3f6   :  { %872 = vrcp.f32 %v315_v17 }
 0x3f7   :  { %874 = vrcp.f32 %v312_v16 }
 0x3fc   :  { %v873_v18 = vpop.eup %872 }
 0x3fd   :  { %v325_v19 = vmul.f32 %v873_v18, %v867_v5  ;;  %v309_v20 = vpop.xlane.xlu2 %308  ;;  %v875_v23 = vpop.eup %874 }
 0x3fe   :  { %876 = vrcp.f32 %v309_v20  ;;  %v324_v25 = vmul.f32 %v875_v23, %v865_v57 }
 0x3ff   :  { %v329_v21 = vpack.c.bf16 %v325_v19, %v325_v19 }
 0x400   :  { %v328_v32 = vpack.c.bf16 %v324_v25, %v324_v25 }
 0x401   :  { %765 = vmatmul.msk.bf16.vlgmr.msrb.gmra.mxu3 %vm282_vm12, %v329_v21 }
 0x404   :  { %v877_v24 = vpop.eup %876 }
 0x405   :  { %v318_v22 = vpop.xlane.xlu2 %317  ;;  %v323_v29 = vmul.f32 %v877_v24, %v869_v12 }
 0x406   :  { %878 = vrcp.f32 %v318_v22 }
 0x407   :  { %v327_v34 = vpack.c.bf16 %v323_v29, %v323_v29 }
 0x408   :  { %v396_v6 = vpop.permute.xlu0 %395 }
 0x409   :  { %v401_v62 = vsel %vm336_vm13, %v396_v6, 0 }
 0x40a   :  { %410 = vmatpush.bf16.msra.mxu0 %v401_v62 }
 0x40c   :  { %v879_v60 = vpop.eup %878 }
 0x40d   :  { %v326_v26 = vmul.f32 %v879_v60, %v871_v14  ;;  %v354_v27 = vpop.permute.xlu2 %353  ;;  %v824_v14 = vld [vmem:[%s1118_s2 + $0x20] sm:$0xff] }
 0x40e   :  { %v359_v28 = vsel %vm336_vm13, %v354_v27, 0 }
 0x40f   :  { %v330_v30 = vpack.c.bf16 %v326_v26, %v326_v26  ;;  %368 = vmatpush.bf16.msrb.mxu2 %v359_v28  ;;  %v850_v28 = vld [vmem:[%s1119_s3 + $0x4] ss:$0 sm:$0xff] }
 0x410   :  { %v332_v31 = vpop.permute.xlu0 %331 }
 0x411   :  { %766 = vmatmul.msk.bf16.vlgmr.msra.gmra.mxu0 %vm282_vm12, %v330_v30  ;;  %v338_v33 = vsel %vm336_vm13, %v332_v31, 0 }
 0x412   :  { %347 = vmatpush.bf16.msrb.mxu1 %v338_v33  ;;  %764 = vmatmul.msk.bf16.vlgmr.msrb.gmra.mxu2 %vm282_vm12, %v328_v32  ;;  %v851_v32 = vld [vmem:[%s1119_s3 + $0x5] ss:$0 sm:$0xff] }
 0x415   :  { %763 = vmatmul.msk.bf16.vlgmr.msrb.gmra.mxu1 %vm282_vm12, %v327_v34 }
 0x416   :  { %453 = vmatpush.bf16.msra.mxu1 %v823_v35 }
 0x41a   :  { %454 = vmatpush.bf16.msra.mxu1 %v822_v45 }
 0x484   :  { %v391_v36 = vpop.f32.mrf.mxu3 }
 0x48c   :  { %v393_v37 = vpop.f32.mrf.mxu3 }
 0x48e   :  { %v412_v38 = vpop.f32.mrf.mxu0 }
 0x48f   :  { %v841_v39 = vpack.i.bf16 %v412_v38, %v391_v36 }
 0x491   :  { %842 = vrot.lane.b32.xlu1 %v841_v39, %s916_s12  ;;  %v829_v39 = vld [vmem:[%s1118_s2 + $0x48] sm:$0xff] }
 0x492   :  { %v349_v40 = vpop.f32.mrf.mxu1  ;;  %608 = vmatpush.bf16.msra.mxu3 %v829_v39 }
 0x495   :  { %v370_v41 = vpop.f32.mrf.mxu2 }
 0x496   :  { %v414_v42 = vpop.f32.mrf.mxu0 }
 0x497   :  { %v852_v42 = vld [vmem:[%s1119_s3 + $0x6] ss:$0 sm:$0xff] }
 0x49a   :  { %v351_v43 = vpop.f32.mrf.mxu1 }
 0x49b   :  { %v826_v43 = vld [vmem:[%s1118_s2 + $0x30] sm:$0xff] }
 0x49d   :  { %v372_v44 = vpop.f32.mrf.mxu2 }
 0x503   :  { %v843_v46 = vpop.permute.xlu1 %842 }
 0x504   :  { %v845_v47 = vunpack.i.h.bf16 %v843_v46  ;;  %v844_v48 = vunpack.i.l.bf16 %v843_v46 }
 0x506   :  { %v424_v51 = vsel %vm174_vm8, %v349_v40, %v844_v48  ;;  %v425_v52 = vsel %vm174_vm8, %v370_v41, %v845_v47  ;;  %v828_v40 = vld [vmem:[%s1118_s2 + $0x40] sm:$0xff]  ;;  %v827_v41 = vld [vmem:[%s1118_s2 + $0x38] sm:$0xff] }
 0x507   :  { %v426_v53 = vpack.c.bf16 %v425_v52, %v424_v51  ;;  %609 = vmatpush.bf16.msra.mxu3 %v828_v40 }
 0x509   :  { %775 = vmatmul.msk.bf16.vlgmr.msra.gmra.mxu1 %vm64_vm0, %v426_v53 }
 0x50b   :  { %610 = vmatpush.bf16.msra.mxu3 %v827_v41 }
 0x50f   :  { %611 = vmatpush.bf16.msra.mxu3 %v826_v43 }
 0x586   :  { %v456_v55 = vpop.f32.mrf.mxu1 }
 0x587   :  { %v457_v56 = vadd.f32 %v849_v54, %v456_v55 }
 0x589   :  { %v461_v57 = vadd.f32 %v457_v56, %v973_v49 }
 0x58b   :  { %v463_v58 = vsel %vm64_vm0, %v461_v57, 0.0 }
 0x58c   :  { %464 = vadd.xlane.f32.xlu0 %v463_v58 }
 0x58e   :  { %v458_v59 = vpop.f32.mrf.mxu1 }
 0x58f   :  { %v459_v61 = vadd.f32 %v849_v54, %v458_v59 }
 0x591   :  { %v462_v63 = vadd.f32 %v459_v61, %v975_v50  ;;  %v825_v50 = vld [vmem:[%s1118_s2 + $0x28] sm:$0xff] }
 0x592   :  { %540 = vmatpush.bf16.msra.mxu2 %v825_v50 }
 0x593   :  { %v466_v0 = vsel %vm64_vm0, %v462_v63, 0.0 }
 0x594   :  { %467 = vadd.xlane.f32.xlu1 %v466_v0 }
 0x596   :  { %541 = vmatpush.bf16.msra.mxu2 %v824_v14 }
 0x5ff   :  { %v465_v1 = vpop.xlane.xlu0 %464 }
 0x600   :  { %v469_v2 = vmul.f32 %v465_v1, %v953_v10 }
 0x602   :  { %v471_v3 = vsub.f32 %v461_v57, %v469_v2 }
 0x604   :  { %v473_v4 = vmul.f32 %v471_v3, %v471_v3 }
 0x606   :  { %v475_v5 = vsel %vm64_vm0, %v473_v4, 0.0 }
 0x607   :  { %v468_v7 = vpop.xlane.xlu1 %467  ;;  %476 = vadd.xlane.f32.xlu2 %v475_v5 }
 0x608   :  { %v470_v49 = vmul.f32 %v468_v7, %v953_v10 }
 0x60a   :  { %v472_v8 = vsub.f32 %v462_v63, %v470_v49  ;;  %v853_v49 = vld [vmem:[%s1119_s3 + $0x7] ss:$0 sm:$0xff] }
 0x60c   :  { %v474_v9 = vmul.f32 %v472_v8, %v472_v8 }
 0x60e   :  { %v478_v11 = vsel %vm64_vm0, %v474_v9, 0.0 }
 0x60f   :  { %479 = vadd.xlane.f32.xlu0 %v478_v11 }
 0x67a   :  { %v477_v12 = vpop.xlane.xlu2 %476 }
 0x67b   :  { %v481_v13 = vmul.f32 %v477_v12, %v953_v10 }
 0x67d   :  { %v483_v15 = vadd.f32 1e-12, %v481_v13 }
 0x67f   :  { %880 = vrsqrt.f32 %v483_v15  ;;  %vm491_vm15 = vweird.f32 %v483_v15 }
 0x682   :  { %v480_v16 = vpop.xlane.xlu0 %479 }
 0x683   :  { %v482_v17 = vmul.f32 %v480_v16, %v953_v10 }
 0x685   :  { %v881_v18 = vpop.eup %880  ;;  %v484_v19 = vadd.f32 1e-12, %v482_v17 }
 0x686   :  { %v486_v20 = vmul.f32 %v881_v18, %v483_v15  ;;  %vm492_vm14 = vweird.f32 %v881_v18 }
 0x687   :  { %882 = vrsqrt.f32 %v484_v19  ;;  %vm493_vm1 = vmor %vm491_vm15, %vm492_vm14  ;;  %vm501_vm3 = vweird.f32 %v484_v19 }
 0x688   :  { %v487_v21 = vmul.f32 %v881_v18, %v486_v20 }
 0x68a   :  { %v488_v22 = vmul.f32 0.5, %v487_v21 }
 0x68c   :  { %v489_v6 = vsub.f32 1.5, %v488_v22 }
 0x68d   :  { %v883_v23 = vpop.eup %882 }
 0x68e   :  { %v490_v62 = vmul.f32 %v881_v18, %v489_v6  ;;  %v496_v24 = vmul.f32 %v883_v23, %v484_v19  ;;  %vm502_vm2 = vweird.f32 %v883_v23 }
 0x68f   :  { %vm503_vm4 = vmor %vm501_vm3, %vm502_vm2 }
 0x690   :  { %v497_v60 = vmul.f32 %v883_v23, %v496_v24  ;;  %v494_v25 = vsel %vm493_vm1, %v881_v18, %v490_v62  ;;  %v831_v24 = vld [vmem:[%s1118_s2 + $0x58] sm:$0xff] }
 0x691   :  { %v505_v29 = vmul.f32 %v494_v25, %v471_v3  ;;  %697 = vmatpush.bf16.msrb.mxu0 %v831_v24 }
 0x692   :  { %v498_v26 = vmul.f32 0.5, %v497_v60 }
 0x693   :  { %v508_v33 = vmul.f32 %v850_v28, %v505_v29 }
 0x694   :  { %v499_v27 = vsub.f32 1.5, %v498_v26  ;;  %v830_v26 = vld [vmem:[%s1118_s2 + $0x50] sm:$0xff] }
 0x695   :  { %v511_v36 = vadd.f32 %v851_v32, %v508_v33  ;;  %698 = vmatpush.bf16.msrb.mxu0 %v830_v26 }
 0x696   :  { %v500_v30 = vmul.f32 %v883_v23, %v499_v27 }
 0x698   :  { %v504_v31 = vsel %vm503_vm4, %v883_v23, %v500_v30 }
 0x699   :  { %v506_v34 = vmul.f32 %v504_v31, %v472_v8 }
 0x69b   :  { %v509_v35 = vmul.f32 %v850_v28, %v506_v34 }
 0x69d   :  { %v512_v37 = vadd.f32 %v851_v32, %v509_v35 }
 0x69f   :  { %v513_v38 = vpack.c.bf16 %v512_v37, %v511_v36 }
 0x6a1   :  { %784 = vmatmul.msk.bf16.vlgmr.msra.gmra.mxu2 %vm64_vm0, %v513_v38 }
 0x724   :  { %v543_v44 = vpop.f32.mrf.mxu2 }
 0x725   :  { %v544_v45 = vadd.f32 %v852_v42, %v543_v44 }
 0x727   :  { %v548_v46 = vmul.f32 %v544_v45, %v544_v45 }
 0x729   :  { %v550_v47 = vmul.f32 %v548_v46, %v544_v45  ;;  %v855_v46 = vld [vmem:[%s1119_s3 + $0x9] ss:$0 sm:$0xff] }
 0x72b   :  { %v552_v48 = vmul.f32 0.044715, %v550_v47 }
 0x72c   :  { %v545_v51 = vpop.f32.mrf.mxu2 }
 0x72d   :  { %v554_v52 = vadd.f32 %v552_v48, %v544_v45  ;;  %v546_v53 = vadd.f32 %v852_v42, %v545_v51 }
 0x72f   :  { %v556_v54 = vmul.f32 0.7978846, %v554_v52  ;;  %v549_v55 = vmul.f32 %v546_v53, %v546_v53 }
 0x731   :  { %v551_v56 = vmul.f32 %v549_v55, %v546_v53  ;;  %884 = vtanh.f32 %v556_v54  ;;  %v833_v55 = vld [vmem:[%s1118_s2 + $0x68] sm:$0xff] }
 0x732   :  { %734 = vmatpush.bf16.msrb.mxu1 %v833_v55 }
 0x733   :  { %v553_v57 = vmul.f32 0.044715, %v551_v56  ;;  %v832_v56 = vld [vmem:[%s1118_s2 + $0x60] sm:$0xff] }
 0x735   :  { %v555_v58 = vadd.f32 %v553_v57, %v546_v53 }
 0x736   :  { %735 = vmatpush.bf16.msrb.mxu1 %v832_v56 }
 0x737   :  { %v557_v59 = vmul.f32 0.7978846, %v555_v58  ;;  %v885_v61 = vpop.eup %884  ;;  %v856_v58 = vld [vmem:[%s1119_s3 + $0xa] ss:$0 sm:$0xff] }
 0x738   :  { %v560_v63 = vadd.f32 1.0, %v885_v61 }
 0x739   :  { %886 = vtanh.f32 %v557_v59 }
 0x73a   :  { %v562_v1 = vmul.f32 0.5, %v560_v63 }
 0x73c   :  { %v564_v4 = vmul.f32 %v562_v1, %v544_v45 }
 0x73f   :  { %v887_v0 = vpop.eup %886 }
 0x740   :  { %v561_v2 = vadd.f32 1.0, %v887_v0 }
 0x742   :  { %v563_v3 = vmul.f32 0.5, %v561_v2 }
 0x744   :  { %v565_v5 = vmul.f32 %v563_v3, %v546_v53  ;;  %v857_v3 = vld [vmem:[%s1119_s3 + $0xb] ss:$0 sm:$0xff] }
 0x746   :  { %v566_v7 = vpack.c.bf16 %v565_v5, %v564_v4 }
 0x748   :  { %801 = vmatmul.msk.bf16.vlgmr.msra.gmra.mxu3 %vm600_vm5, %v566_v7 }
 0x7cb   :  { %v613_v8 = vpop.f32.mrf.mxu3 }
 0x7cc   :  { %v614_v9 = vadd.f32 %v853_v49, %v613_v8 }
 0x7ce   :  { %v618_v11 = vadd.f32 %v614_v9, %v511_v36 }
 0x7d0   :  { %v620_v50 = vsel %vm64_vm0, %v618_v11, 0.0 }
 0x7d1   :  { %621 = vadd.xlane.f32.xlu1 %v620_v50 }
 0x7d3   :  { %v615_v12 = vpop.f32.mrf.mxu3 }
 0x7d4   :  { %v616_v13 = vadd.f32 %v853_v49, %v615_v12 }
 0x7d6   :  { %v619_v14 = vadd.f32 %v616_v13, %v512_v37 }
 0x7d8   :  { %v623_v15 = vsel %vm64_vm0, %v619_v14, 0.0 }
 0x7d9   :  { %624 = vadd.xlane.f32.xlu0 %v623_v15 }
 0x844   :  { %v622_v16 = vpop.xlane.xlu1 %621 }
 0x845   :  { %v626_v17 = vmul.f32 %v622_v16, %v953_v10 }
 0x847   :  { %v628_v18 = vsub.f32 %v618_v11, %v626_v17 }
 0x849   :  { %v630_v19 = vmul.f32 %v628_v18, %v628_v18 }
 0x84b   :  { %v632_v20 = vsel %vm64_vm0, %v630_v19, 0.0 }
 0x84c   :  { %v625_v21 = vpop.xlane.xlu0 %624  ;;  %633 = vadd.xlane.f32.xlu1 %v632_v20 }
 0x84d   :  { %v627_v22 = vmul.f32 %v625_v21, %v953_v10 }
 0x84f   :  { %v629_v6 = vsub.f32 %v619_v14, %v627_v22 }
 0x851   :  { %v631_v23 = vmul.f32 %v629_v6, %v629_v6 }
 0x853   :  { %v635_v62 = vsel %vm64_vm0, %v631_v23, 0.0 }
 0x854   :  { %636 = vadd.xlane.f32.xlu2 %v635_v62 }
 0x8bf   :  { %v634_v60 = vpop.xlane.xlu1 %633 }
 0x8c0   :  { %v638_v25 = vmul.f32 %v634_v60, %v953_v10 }
 0x8c2   :  { %v640_v27 = vadd.f32 1e-12, %v638_v25 }
 0x8c4   :  { %888 = vrsqrt.f32 %v640_v27  ;;  %vm648_vm7 = vweird.f32 %v640_v27 }
 0x8c7   :  { %v637_v28 = vpop.xlane.xlu2 %636 }
 0x8c8   :  { %v639_v29 = vmul.f32 %v637_v28, %v953_v10  ;;  %v854_v10 = vld [vmem:[%s1119_s3 + $0x8] ss:$0 sm:$0xff] }
 0x8ca   :  { %v889_v30 = vpop.eup %888  ;;  %v641_v31 = vadd.f32 1e-12, %v639_v29 }
 0x8cb   :  { %v643_v32 = vmul.f32 %v889_v30, %v640_v27  ;;  %vm649_vm6 = vweird.f32 %v889_v30 }
 0x8cc   :  { %890 = vrsqrt.f32 %v641_v31  ;;  %vm650_vm8 = vmor %vm648_vm7, %vm649_vm6  ;;  %vm658_vm10 = vweird.f32 %v641_v31 }
 0x8cd   :  { %v644_v33 = vmul.f32 %v889_v30, %v643_v32 }
 0x8cf   :  { %v645_v34 = vmul.f32 0.5, %v644_v33 }
 0x8d1   :  { %v646_v35 = vsub.f32 1.5, %v645_v34 }
 0x8d2   :  { %v891_v36 = vpop.eup %890 }
 0x8d3   :  { %v647_v37 = vmul.f32 %v889_v30, %v646_v35  ;;  %v653_v38 = vmul.f32 %v891_v36, %v641_v31  ;;  %vm659_vm9 = vweird.f32 %v891_v36 }
 0x8d4   :  { %vm660_vm11 = vmor %vm658_vm10, %vm659_vm9 }
 0x8d5   :  { %v654_v39 = vmul.f32 %v891_v36, %v653_v38  ;;  %v651_v40 = vsel %vm650_vm8, %v889_v30, %v647_v37 }
 0x8d6   :  { %v662_v43 = vmul.f32 %v651_v40, %v628_v18 }
 0x8d7   :  { %v655_v41 = vmul.f32 0.5, %v654_v39 }
 0x8d8   :  { %v665_v47 = vmul.f32 %v854_v10, %v662_v43 }
 0x8d9   :  { %v656_v42 = vsub.f32 1.5, %v655_v41 }
 0x8da   :  { %v668_v52 = vadd.f32 %v855_v46, %v665_v47 }
 0x8db   :  { %v657_v44 = vmul.f32 %v891_v36, %v656_v42 }
 0x8dd   :  { %v661_v45 = vsel %vm660_vm11, %v891_v36, %v657_v44 }
 0x8de   :  { %v663_v48 = vmul.f32 %v661_v45, %v629_v6 }
 0x8e0   :  { %v666_v51 = vmul.f32 %v854_v10, %v663_v48 }
 0x8e2   :  { %v669_v53 = vadd.f32 %v855_v46, %v666_v51 }
 0x8e4   :  { %v670_v54 = vpack.c.bf16 %v669_v53, %v668_v52 }
 0x8e6   :  { %810 = vmatmul.msk.bf16.vlgmr.msrb.gmra.mxu0 %vm64_vm0, %v670_v54 }
 0x963   :  { %v700_v57 = vpop.f32.mrf.mxu0 }
 0x964   :  { %v701_v59 = vadd.f32 %v856_v58, %v700_v57 }
 0x966   :  { %892 = vtanh.f32 %v701_v59 }
 0x96b   :  { %v702_v61 = vpop.f32.mrf.mxu0 }
 0x96c   :  { %v703_v63 = vadd.f32 %v856_v58, %v702_v61  ;;  %v893_v0 = vpop.eup %892 }
 0x96e   :  { %894 = vtanh.f32 %v703_v63 }
 0x974   :  { %v895_v1 = vpop.eup %894 }
 0x975   :  { %v707_v2 = vpack.c.bf16 %v895_v1, %v893_v0 }
 0x977   :  { %819 = vmatmul.msk.bf16.vlgmr.msrb.gmra.mxu1 %vm64_vm0, %v707_v2 }
 0x9f4   :  { %v737_v4 = vpop.f32.mrf.mxu1 }
 0x9f5   :  { %v738_v5 = vadd.f32 %v857_v3, %v737_v4 }
 0x9f7   :  { %742 = vst [vmem:[%s1120_s4] sm:$0xff] %v738_v5 }
 0x9fc   :  { %v739_v7 = vpop.f32.mrf.mxu1 }
 0x9fd   :  { %v740_v49 = vadd.f32 %v857_v3, %v739_v7 }
 0x9ff   :  { %743 = vst [vmem:[%s1120_s4 + $0x8] sm:$0xff] %v740_v49 }
 0xa00   :  { %748 = vsyncpa [#allocation3], 1 }

</bundles_post_ra>
